<compile_context>
chip_gen: v7x
topology: tpu7x:2x2x1
jax: 0.10.0
libtpu: 0.0.40
codegen_flags: <defaults>
</compile_context>

<pallas_src>
import math
import functools

import jax
import jax.numpy as jnp
from jax.experimental import pallas as pl
from jax.experimental.pallas import tpu as pltpu


def _attention_pool_kernel(num_heads, head_ch,
                           x_ref, pos0_ref, poss_ref,
                           wq_ref, wkv_ref, bqkv_ref,
                           wc_ref, bc_ref, o_ref):
    """Fused AttentionPool2d forward for one batch element.

    x_ref:    (1, C, T0)   flattened NCHW spatial input (T0 lane-dense)
    pos0_ref: (C, 1)       positional embedding of the mean token
    poss_ref: (C, T0)      positional embedding of the spatial tokens
    wq_ref:   (C, C)       q projection weight (only needed at t=0)
    wkv_ref:  (2C, C)      stacked k,v projection weight
    bqkv_ref: (3C, 1)      qkv projection bias (q | k | v)
    wc_ref:   (Cout, C)    output projection weight
    bc_ref:   (Cout, 1)    output projection bias
    o_ref:    (1, Cout, 1) output (token 0 only)
    """
    C = x_ref.shape[1]
    T0 = x_ref.shape[2]

    x = x_ref[0]                                            # (C, T0)

    # mean token + positional embedding
    x_mean = jnp.mean(x, axis=-1, keepdims=True)            # (C, 1)
    x0 = x_mean + pos0_ref[...]                             # (C, 1)  token 0
    xs = x + poss_ref[...]                                  # (C, T0) spatial tokens

    bq = bqkv_ref[:C, :]                                    # (C, 1)
    bkv = bqkv_ref[C:, :]                                   # (2C, 1)

    # projections: one lane-dense MXU matmul for k,v over all spatial tokens,
    # tiny column matmuls for the mean token.
    kv_s = jnp.dot(wkv_ref[...], xs,
                   preferred_element_type=jnp.float32) + bkv        # (2C, T0)
    kv_0 = jnp.dot(wkv_ref[...], x0,
                   preferred_element_type=jnp.float32) + bkv        # (2C, 1)
    q_0 = jnp.dot(wq_ref[...], x0,
                  preferred_element_type=jnp.float32) + bq          # (C, 1)

    k_s = kv_s[:C, :]
    v_s = kv_s[C:, :]
    k_0 = kv_0[:C, :]
    v_0 = kv_0[C:, :]

    # logits scaled by (1/ch^0.25)^2 = 1/sqrt(ch), as in QKVAttention
    inv_sqrt_ch = 1.0 / math.sqrt(head_ch)

    head_out = []
    for h in range(num_heads):                   # few heads; aligned 8-row slices
        lo = h * head_ch
        hi = lo + head_ch
        qh = q_0[lo:hi, :]                       # (ch, 1)
        kh_s = k_s[lo:hi, :]                     # (ch, T0)
        kh_0 = k_0[lo:hi, :]                     # (ch, 1)
        vh_s = v_s[lo:hi, :]                     # (ch, T0)
        vh_0 = v_0[lo:hi, :]                     # (ch, 1)

        s_s = jnp.sum(qh * kh_s, axis=0, keepdims=True) * inv_sqrt_ch   # (1, T0)
        s_0 = jnp.sum(qh * kh_0, axis=0, keepdims=True) * inv_sqrt_ch   # (1, 1)

        m_h = jnp.maximum(jnp.max(s_s, axis=-1, keepdims=True), s_0)    # (1, 1)
        e_s = jnp.exp(s_s - m_h)                                        # (1, T0)
        e_0 = jnp.exp(s_0 - m_h)                                        # (1, 1)
        denom = e_0 + jnp.sum(e_s, axis=-1, keepdims=True)              # (1, 1)

        num = jnp.sum(vh_s * e_s, axis=-1, keepdims=True) + vh_0 * e_0  # (ch, 1)
        head_out.append(num / denom)                                    # (ch, 1)

    a = jnp.concatenate(head_out, axis=0)                               # (C, 1)

    out = jnp.dot(wc_ref[...], a,
                  preferred_element_type=jnp.float32) + bc_ref[...]     # (Cout, 1)
    o_ref[0] = out.astype(o_ref.dtype)


def attention_pool_2d(x_nchw, pos_emb, w_qkv, b_qkv, w_c, b_c, *, num_heads):
    """AttentionPool2d forward. x_nchw: (B, C, H, W) -> (B, output_dim)."""
    B, C, H, W = x_nchw.shape
    T0 = H * W
    Cout = w_c.shape[0]
    assert C % num_heads == 0
    head_ch = C // num_heads
    assert pos_emb.shape == (C, T0 + 1)

    # Free row-major reshape; T0 stays on the (lane) minor axis.
    x_flat = x_nchw.reshape(B, C, T0)

    # Tiny parameter-side prep (2-D weight slabs, split pos emb, stacked bias).
    wq = w_qkv[:C, :, 0].astype(jnp.float32)           # (C, C)
    wkv = w_qkv[C:, :, 0].astype(jnp.float32)          # (2C, C)
    bqkv = b_qkv.reshape(3 * C, 1).astype(jnp.float32)
    pos0 = pos_emb[:, :1].astype(jnp.float32)          # (C, 1)
    poss = pos_emb[:, 1:].astype(jnp.float32)          # (C, T0)
    wc2 = w_c[:, :, 0].astype(jnp.float32)             # (Cout, C)
    bc2 = b_c.reshape(Cout, 1).astype(jnp.float32)

    kernel = functools.partial(_attention_pool_kernel, num_heads, head_ch)

    out = pl.pallas_call(
        kernel,
        out_shape=jax.ShapeDtypeStruct((B, Cout, 1), jnp.float32),
        grid_spec=pltpu.PrefetchScalarGridSpec(
            num_scalar_prefetch=0,
            grid=(B,),
            in_specs=[
                pl.BlockSpec((1, C, T0), lambda n: (n, 0, 0)),
                pl.BlockSpec((C, 1), lambda n: (0, 0)),
                pl.BlockSpec((C, T0), lambda n: (0, 0)),
                pl.BlockSpec((C, C), lambda n: (0, 0)),
                pl.BlockSpec((2 * C, C), lambda n: (0, 0)),
                pl.BlockSpec((3 * C, 1), lambda n: (0, 0)),
                pl.BlockSpec((Cout, C), lambda n: (0, 0)),
                pl.BlockSpec((Cout, 1), lambda n: (0, 0)),
            ],
            out_specs=pl.BlockSpec((1, Cout, 1), lambda n: (n, 0, 0)),
        ),
        compiler_params=pltpu.CompilerParams(
            dimension_semantics=("parallel",),
        ),
    )(x_flat, pos0, poss, wq, wkv, bqkv, wc2, bc2)

    return out.reshape(B, Cout)


def reference_forward(x_nchw, pos_emb, w_qkv, b_qkv, w_c, b_c, *, num_heads):
    """Pure-JAX reference matching the PyTorch AttentionPool2d forward."""
    B, C, H, W = x_nchw.shape
    T0 = H * W
    hp = jax.lax.Precision.HIGHEST

    xf = x_nchw.reshape(B, C, T0)
    xm = jnp.mean(xf, axis=-1, keepdims=True)
    xc = jnp.concatenate([xm, xf], axis=-1) + pos_emb[None]           # (B, C, T)
    qkv = jnp.einsum('oc,bct->bot', w_qkv[:, :, 0], xc,
                     precision=hp) + b_qkv[None, :, None]             # (B, 3C, T)

    T = T0 + 1
    ch = C // num_heads
    q, k, v = jnp.split(qkv, 3, axis=1)
    scale = 1.0 / math.sqrt(math.sqrt(ch))
    qh = (q * scale).reshape(B * num_heads, ch, T)
    kh = (k * scale).reshape(B * num_heads, ch, T)
    vh = v.reshape(B * num_heads, ch, T)

    w_att = jnp.einsum('bct,bcs->bts', qh, kh, precision=hp)
    w_att = jax.nn.softmax(w_att, axis=-1)
    a = jnp.einsum('bts,bcs->bct', w_att, vh, precision=hp).reshape(B, C, T)

    out = jnp.einsum('oc,bct->bot', w_c[:, :, 0], a,
                     precision=hp) + b_c[None, :, None]
    return out[:, :, 0]


if __name__ == "__main__":
    B = 2
    spacial_dim = 16            # -> H = W = 16, T0 = 256
    embed_dim = 32
    num_heads_channels = 8      # -> num_heads = 4, head dim ch = 8
    output_dim = 32
    num_heads = embed_dim // num_heads_channels

    key = jax.random.PRNGKey(0)
    kx, kpos, kwq, kbq, kwc, kbc = jax.random.split(key, 6)

    x = jax.random.normal(kx, (B, embed_dim, spacial_dim, spacial_dim), jnp.float32)
    pos_emb = (jax.random.normal(kpos, (embed_dim, spacial_dim ** 2 + 1), jnp.float32)
               / (embed_dim ** 0.5))

    bound = 1.0 / (embed_dim ** 0.5)          # conv1d fan_in = embed_dim * 1
    w_qkv = jax.random.uniform(kwq, (3 * embed_dim, embed_dim, 1), jnp.float32,
                               -bound, bound)
    b_qkv = jax.random.uniform(kbq, (3 * embed_dim,), jnp.float32, -bound, bound)
    w_c = jax.random.uniform(kwc, (output_dim, embed_dim, 1), jnp.float32,
                             -bound, bound)
    b_c = jax.random.uniform(kbc, (output_dim,), jnp.float32, -bound, bound)

    out = attention_pool_2d(x, pos_emb, w_qkv, b_qkv, w_c, b_c, num_heads=num_heads)
    out = jax.block_until_ready(out)

    ref = reference_forward(x, pos_emb, w_qkv, b_qkv, w_c, b_c, num_heads=num_heads)
    assert out.shape == (B, output_dim)
    max_err = jnp.max(jnp.abs(out - ref))
    assert jnp.allclose(out, ref, atol=2e-3, rtol=2e-3), f"max abs err {max_err}"

    print("KERNEL_OK")
</pallas_src>

<mosaic_0001>
module attributes {stable_mosaic.version = 11 : i64} {
  func.func @_attention_pool_kernel(%arg0: i32, %arg1: memref<1x32x256xf32, #tpu.memory_space<vmem>>, %arg2: memref<32x1xf32, #tpu.memory_space<vmem>>, %arg3: memref<32x256xf32, #tpu.memory_space<vmem>>, %arg4: memref<32x32xf32, #tpu.memory_space<vmem>>, %arg5: memref<64x32xf32, #tpu.memory_space<vmem>>, %arg6: memref<96x1xf32, #tpu.memory_space<vmem>>, %arg7: memref<32x32xf32, #tpu.memory_space<vmem>>, %arg8: memref<32x1xf32, #tpu.memory_space<vmem>>, %arg9: memref<1x32x1xf32, #tpu.memory_space<vmem>>) attributes {dimension_semantics = [#tpu.dimension_semantics<parallel>], iteration_bounds = array<i64: 2>, scalar_prefetch = 0 : i64, scratch_operands = 0 : i64, tpu.core_type = #tpu.core_type<tc>, window_params = [{transform_indices = @transform_0, window_bounds = array<i64: 1, 32, 256>}, {pipeline_mode = #tpu.pipeline_mode<synchronous>, transform_indices = @transform_1, window_bounds = array<i64: 32, 1>}, {pipeline_mode = #tpu.pipeline_mode<synchronous>, transform_indices = @transform_2, window_bounds = array<i64: 32, 256>}, {pipeline_mode = #tpu.pipeline_mode<synchronous>, transform_indices = @transform_3, window_bounds = array<i64: 32, 32>}, {pipeline_mode = #tpu.pipeline_mode<synchronous>, transform_indices = @transform_4, window_bounds = array<i64: 64, 32>}, {pipeline_mode = #tpu.pipeline_mode<synchronous>, transform_indices = @transform_5, window_bounds = array<i64: 96, 1>}, {pipeline_mode = #tpu.pipeline_mode<synchronous>, transform_indices = @transform_6, window_bounds = array<i64: 32, 32>}, {pipeline_mode = #tpu.pipeline_mode<synchronous>, transform_indices = @transform_7, window_bounds = array<i64: 32, 1>}, {transform_indices = @transform_8, window_bounds = array<i64: 1, 32, 1>}]} {
    %c0 = arith.constant 0 : index
    %c0_0 = arith.constant 0 : index
    %c0_1 = arith.constant 0 : index
    %0 = vector.load %arg1[%c0, %c0_0, %c0_1] : memref<1x32x256xf32, #tpu.memory_space<vmem>>, vector<1x32x256xf32>
    %1 = vector.shape_cast %0 : vector<1x32x256xf32> to vector<32x256xf32>
    %cst = arith.constant dense<0.000000e+00> : vector<32xf32>
    %2 = vector.multi_reduction <add>, %1, %cst [1] : vector<32x256xf32> to vector<32xf32>
    %3 = vector.shape_cast %2 : vector<32xf32> to vector<32x1xf32>
    %cst_2 = arith.constant 2.560000e+02 : f32
    %4 = vector.broadcast %cst_2 : f32 to vector<32x1xf32>
    %5 = arith.divf %3, %4 : vector<32x1xf32>
    %c0_3 = arith.constant 0 : index
    %c0_4 = arith.constant 0 : index
    %6 = vector.load %arg2[%c0_3, %c0_4] : memref<32x1xf32, #tpu.memory_space<vmem>>, vector<32x1xf32>
    %7 = arith.addf %5, %6 : vector<32x1xf32>
    %c0_5 = arith.constant 0 : index
    %c0_6 = arith.constant 0 : index
    %8 = vector.load %arg3[%c0_5, %c0_6] : memref<32x256xf32, #tpu.memory_space<vmem>>, vector<32x256xf32>
    %9 = arith.addf %1, %8 : vector<32x256xf32>
    %c0_7 = arith.constant 0 : index
    %c0_8 = arith.constant 0 : index
    %10 = vector.load %arg6[%c0_7, %c0_8] : memref<96x1xf32, #tpu.memory_space<vmem>>, vector<32x1xf32>
    %c32 = arith.constant 32 : index
    %c0_9 = arith.constant 0 : index
    %11 = vector.load %arg6[%c32, %c0_9] : memref<96x1xf32, #tpu.memory_space<vmem>>, vector<64x1xf32>
    %c0_10 = arith.constant 0 : index
    %c0_11 = arith.constant 0 : index
    %12 = vector.load %arg5[%c0_10, %c0_11] : memref<64x32xf32, #tpu.memory_space<vmem>>, vector<64x32xf32>
    %cst_12 = arith.constant dense<0.000000e+00> : vector<64x256xf32>
    %13 = tpu.matmul %12, %9, %cst_12 {dimension_numbers = #tpu.dot_dimension_numbers<[1], [0], [0], [1], [0, 0, 1, 1], [], []>} : vector<64x32xf32>, vector<32x256xf32>, vector<64x256xf32> -> vector<64x256xf32>
    %14 = vector.broadcast %11 : vector<64x1xf32> to vector<64x256xf32>
    %15 = arith.addf %13, %14 : vector<64x256xf32>
    %c0_13 = arith.constant 0 : index
    %c0_14 = arith.constant 0 : index
    %16 = vector.load %arg5[%c0_13, %c0_14] : memref<64x32xf32, #tpu.memory_space<vmem>>, vector<64x32xf32>
    %cst_15 = arith.constant dense<0.000000e+00> : vector<64x1xf32>
    %17 = tpu.matmul %16, %7, %cst_15 {dimension_numbers = #tpu.dot_dimension_numbers<[1], [0], [0], [1], [0, 0, 1, 1], [], []>} : vector<64x32xf32>, vector<32x1xf32>, vector<64x1xf32> -> vector<64x1xf32>
    %18 = arith.addf %17, %11 : vector<64x1xf32>
    %c0_16 = arith.constant 0 : index
    %c0_17 = arith.constant 0 : index
    %19 = vector.load %arg4[%c0_16, %c0_17] : memref<32x32xf32, #tpu.memory_space<vmem>>, vector<32x32xf32>
    %cst_18 = arith.constant dense<0.000000e+00> : vector<32x1xf32>
    %20 = tpu.matmul %19, %7, %cst_18 {dimension_numbers = #tpu.dot_dimension_numbers<[1], [0], [0], [1], [0, 0, 1, 1], [], []>} : vector<32x32xf32>, vector<32x1xf32>, vector<32x1xf32> -> vector<32x1xf32>
    %21 = arith.addf %20, %10 : vector<32x1xf32>
    %22 = vector.extract_strided_slice %15 {offsets = [0, 0], sizes = [32, 256], strides = [1, 1]} : vector<64x256xf32> to vector<32x256xf32>
    %23 = vector.extract_strided_slice %15 {offsets = [32, 0], sizes = [32, 256], strides = [1, 1]} : vector<64x256xf32> to vector<32x256xf32>
    %24 = vector.extract_strided_slice %18 {offsets = [0, 0], sizes = [32, 1], strides = [1, 1]} : vector<64x1xf32> to vector<32x1xf32>
    %25 = vector.extract_strided_slice %18 {offsets = [32, 0], sizes = [32, 1], strides = [1, 1]} : vector<64x1xf32> to vector<32x1xf32>
    %26 = vector.extract_strided_slice %21 {offsets = [0, 0], sizes = [8, 1], strides = [1, 1]} : vector<32x1xf32> to vector<8x1xf32>
    %27 = vector.extract_strided_slice %22 {offsets = [0, 0], sizes = [8, 256], strides = [1, 1]} : vector<32x256xf32> to vector<8x256xf32>
    %28 = vector.extract_strided_slice %24 {offsets = [0, 0], sizes = [8, 1], strides = [1, 1]} : vector<32x1xf32> to vector<8x1xf32>
    %29 = vector.extract_strided_slice %23 {offsets = [0, 0], sizes = [8, 256], strides = [1, 1]} : vector<32x256xf32> to vector<8x256xf32>
    %30 = vector.extract_strided_slice %25 {offsets = [0, 0], sizes = [8, 1], strides = [1, 1]} : vector<32x1xf32> to vector<8x1xf32>
    %31 = vector.broadcast %26 : vector<8x1xf32> to vector<8x256xf32>
    %32 = arith.mulf %31, %27 : vector<8x256xf32>
    %cst_19 = arith.constant dense<0.000000e+00> : vector<256xf32>
    %33 = vector.multi_reduction <add>, %32, %cst_19 [0] : vector<8x256xf32> to vector<256xf32>
    %34 = vector.shape_cast %33 : vector<256xf32> to vector<1x256xf32>
    %cst_20 = arith.constant 0.353553385 : f32
    %35 = vector.broadcast %cst_20 : f32 to vector<1x256xf32>
    %36 = arith.mulf %34, %35 : vector<1x256xf32>
    %37 = arith.mulf %26, %28 : vector<8x1xf32>
    %cst_21 = arith.constant dense<0.000000e+00> : vector<1xf32>
    %38 = vector.multi_reduction <add>, %37, %cst_21 [0] : vector<8x1xf32> to vector<1xf32>
    %39 = vector.shape_cast %38 : vector<1xf32> to vector<1x1xf32>
    %cst_22 = arith.constant 0.353553385 : f32
    %40 = vector.broadcast %cst_22 : f32 to vector<1x1xf32>
    %41 = arith.mulf %39, %40 : vector<1x1xf32>
    %cst_23 = arith.constant dense<0xFF800000> : vector<1xf32>
    %42 = vector.multi_reduction <maximumf>, %36, %cst_23 [1] : vector<1x256xf32> to vector<1xf32>
    %43 = vector.shape_cast %42 : vector<1xf32> to vector<1x1xf32>
    %44 = arith.maximumf %43, %41 : vector<1x1xf32>
    %45 = vector.broadcast %44 : vector<1x1xf32> to vector<1x256xf32>
    %46 = arith.subf %36, %45 : vector<1x256xf32>
    %47 = math.exp %46 : vector<1x256xf32>
    %48 = arith.subf %41, %44 : vector<1x1xf32>
    %49 = math.exp %48 : vector<1x1xf32>
    %cst_24 = arith.constant dense<0.000000e+00> : vector<1xf32>
    %50 = vector.multi_reduction <add>, %47, %cst_24 [1] : vector<1x256xf32> to vector<1xf32>
    %51 = vector.shape_cast %50 : vector<1xf32> to vector<1x1xf32>
    %52 = arith.addf %49, %51 : vector<1x1xf32>
    %53 = vector.broadcast %47 : vector<1x256xf32> to vector<8x256xf32>
    %54 = arith.mulf %29, %53 : vector<8x256xf32>
    %cst_25 = arith.constant dense<0.000000e+00> : vector<8xf32>
    %55 = vector.multi_reduction <add>, %54, %cst_25 [1] : vector<8x256xf32> to vector<8xf32>
    %56 = vector.shape_cast %55 : vector<8xf32> to vector<8x1xf32>
    %57 = vector.broadcast %49 : vector<1x1xf32> to vector<8x1xf32>
    %58 = arith.mulf %30, %57 : vector<8x1xf32>
    %59 = arith.addf %56, %58 : vector<8x1xf32>
    %60 = vector.broadcast %52 : vector<1x1xf32> to vector<8x1xf32>
    %61 = arith.divf %59, %60 : vector<8x1xf32>
    %62 = vector.extract_strided_slice %21 {offsets = [8, 0], sizes = [8, 1], strides = [1, 1]} : vector<32x1xf32> to vector<8x1xf32>
    %63 = vector.extract_strided_slice %22 {offsets = [8, 0], sizes = [8, 256], strides = [1, 1]} : vector<32x256xf32> to vector<8x256xf32>
    %64 = vector.extract_strided_slice %24 {offsets = [8, 0], sizes = [8, 1], strides = [1, 1]} : vector<32x1xf32> to vector<8x1xf32>
    %65 = vector.extract_strided_slice %23 {offsets = [8, 0], sizes = [8, 256], strides = [1, 1]} : vector<32x256xf32> to vector<8x256xf32>
    %66 = vector.extract_strided_slice %25 {offsets = [8, 0], sizes = [8, 1], strides = [1, 1]} : vector<32x1xf32> to vector<8x1xf32>
    %67 = vector.broadcast %62 : vector<8x1xf32> to vector<8x256xf32>
    %68 = arith.mulf %67, %63 : vector<8x256xf32>
    %cst_26 = arith.constant dense<0.000000e+00> : vector<256xf32>
    %69 = vector.multi_reduction <add>, %68, %cst_26 [0] : vector<8x256xf32> to vector<256xf32>
    %70 = vector.shape_cast %69 : vector<256xf32> to vector<1x256xf32>
    %cst_27 = arith.constant 0.353553385 : f32
    %71 = vector.broadcast %cst_27 : f32 to vector<1x256xf32>
    %72 = arith.mulf %70, %71 : vector<1x256xf32>
    %73 = arith.mulf %62, %64 : vector<8x1xf32>
    %cst_28 = arith.constant dense<0.000000e+00> : vector<1xf32>
    %74 = vector.multi_reduction <add>, %73, %cst_28 [0] : vector<8x1xf32> to vector<1xf32>
    %75 = vector.shape_cast %74 : vector<1xf32> to vector<1x1xf32>
    %cst_29 = arith.constant 0.353553385 : f32
    %76 = vector.broadcast %cst_29 : f32 to vector<1x1xf32>
    %77 = arith.mulf %75, %76 : vector<1x1xf32>
    %cst_30 = arith.constant dense<0xFF800000> : vector<1xf32>
    %78 = vector.multi_reduction <maximumf>, %72, %cst_30 [1] : vector<1x256xf32> to vector<1xf32>
    %79 = vector.shape_cast %78 : vector<1xf32> to vector<1x1xf32>
    %80 = arith.maximumf %79, %77 : vector<1x1xf32>
    %81 = vector.broadcast %80 : vector<1x1xf32> to vector<1x256xf32>
    %82 = arith.subf %72, %81 : vector<1x256xf32>
    %83 = math.exp %82 : vector<1x256xf32>
    %84 = arith.subf %77, %80 : vector<1x1xf32>
    %85 = math.exp %84 : vector<1x1xf32>
    %cst_31 = arith.constant dense<0.000000e+00> : vector<1xf32>
    %86 = vector.multi_reduction <add>, %83, %cst_31 [1] : vector<1x256xf32> to vector<1xf32>
    %87 = vector.shape_cast %86 : vector<1xf32> to vector<1x1xf32>
    %88 = arith.addf %85, %87 : vector<1x1xf32>
    %89 = vector.broadcast %83 : vector<1x256xf32> to vector<8x256xf32>
    %90 = arith.mulf %65, %89 : vector<8x256xf32>
    %cst_32 = arith.constant dense<0.000000e+00> : vector<8xf32>
    %91 = vector.multi_reduction <add>, %90, %cst_32 [1] : vector<8x256xf32> to vector<8xf32>
    %92 = vector.shape_cast %91 : vector<8xf32> to vector<8x1xf32>
    %93 = vector.broadcast %85 : vector<1x1xf32> to vector<8x1xf32>
    %94 = arith.mulf %66, %93 : vector<8x1xf32>
    %95 = arith.addf %92, %94 : vector<8x1xf32>
    %96 = vector.broadcast %88 : vector<1x1xf32> to vector<8x1xf32>
    %97 = arith.divf %95, %96 : vector<8x1xf32>
    %98 = vector.extract_strided_slice %21 {offsets = [16, 0], sizes = [8, 1], strides = [1, 1]} : vector<32x1xf32> to vector<8x1xf32>
    %99 = vector.extract_strided_slice %22 {offsets = [16, 0], sizes = [8, 256], strides = [1, 1]} : vector<32x256xf32> to vector<8x256xf32>
    %100 = vector.extract_strided_slice %24 {offsets = [16, 0], sizes = [8, 1], strides = [1, 1]} : vector<32x1xf32> to vector<8x1xf32>
    %101 = vector.extract_strided_slice %23 {offsets = [16, 0], sizes = [8, 256], strides = [1, 1]} : vector<32x256xf32> to vector<8x256xf32>
    %102 = vector.extract_strided_slice %25 {offsets = [16, 0], sizes = [8, 1], strides = [1, 1]} : vector<32x1xf32> to vector<8x1xf32>
    %103 = vector.broadcast %98 : vector<8x1xf32> to vector<8x256xf32>
    %104 = arith.mulf %103, %99 : vector<8x256xf32>
    %cst_33 = arith.constant dense<0.000000e+00> : vector<256xf32>
    %105 = vector.multi_reduction <add>, %104, %cst_33 [0] : vector<8x256xf32> to vector<256xf32>
    %106 = vector.shape_cast %105 : vector<256xf32> to vector<1x256xf32>
    %cst_34 = arith.constant 0.353553385 : f32
    %107 = vector.broadcast %cst_34 : f32 to vector<1x256xf32>
    %108 = arith.mulf %106, %107 : vector<1x256xf32>
    %109 = arith.mulf %98, %100 : vector<8x1xf32>
    %cst_35 = arith.constant dense<0.000000e+00> : vector<1xf32>
    %110 = vector.multi_reduction <add>, %109, %cst_35 [0] : vector<8x1xf32> to vector<1xf32>
    %111 = vector.shape_cast %110 : vector<1xf32> to vector<1x1xf32>
    %cst_36 = arith.constant 0.353553385 : f32
    %112 = vector.broadcast %cst_36 : f32 to vector<1x1xf32>
    %113 = arith.mulf %111, %112 : vector<1x1xf32>
    %cst_37 = arith.constant dense<0xFF800000> : vector<1xf32>
    %114 = vector.multi_reduction <maximumf>, %108, %cst_37 [1] : vector<1x256xf32> to vector<1xf32>
    %115 = vector.shape_cast %114 : vector<1xf32> to vector<1x1xf32>
    %116 = arith.maximumf %115, %113 : vector<1x1xf32>
    %117 = vector.broadcast %116 : vector<1x1xf32> to vector<1x256xf32>
    %118 = arith.subf %108, %117 : vector<1x256xf32>
    %119 = math.exp %118 : vector<1x256xf32>
    %120 = arith.subf %113, %116 : vector<1x1xf32>
    %121 = math.exp %120 : vector<1x1xf32>
    %cst_38 = arith.constant dense<0.000000e+00> : vector<1xf32>
    %122 = vector.multi_reduction <add>, %119, %cst_38 [1] : vector<1x256xf32> to vector<1xf32>
    %123 = vector.shape_cast %122 : vector<1xf32> to vector<1x1xf32>
    %124 = arith.addf %121, %123 : vector<1x1xf32>
    %125 = vector.broadcast %119 : vector<1x256xf32> to vector<8x256xf32>
    %126 = arith.mulf %101, %125 : vector<8x256xf32>
    %cst_39 = arith.constant dense<0.000000e+00> : vector<8xf32>
    %127 = vector.multi_reduction <add>, %126, %cst_39 [1] : vector<8x256xf32> to vector<8xf32>
    %128 = vector.shape_cast %127 : vector<8xf32> to vector<8x1xf32>
    %129 = vector.broadcast %121 : vector<1x1xf32> to vector<8x1xf32>
    %130 = arith.mulf %102, %129 : vector<8x1xf32>
    %131 = arith.addf %128, %130 : vector<8x1xf32>
    %132 = vector.broadcast %124 : vector<1x1xf32> to vector<8x1xf32>
    %133 = arith.divf %131, %132 : vector<8x1xf32>
    %134 = vector.extract_strided_slice %21 {offsets = [24, 0], sizes = [8, 1], strides = [1, 1]} : vector<32x1xf32> to vector<8x1xf32>
    %135 = vector.extract_strided_slice %22 {offsets = [24, 0], sizes = [8, 256], strides = [1, 1]} : vector<32x256xf32> to vector<8x256xf32>
    %136 = vector.extract_strided_slice %24 {offsets = [24, 0], sizes = [8, 1], strides = [1, 1]} : vector<32x1xf32> to vector<8x1xf32>
    %137 = vector.extract_strided_slice %23 {offsets = [24, 0], sizes = [8, 256], strides = [1, 1]} : vector<32x256xf32> to vector<8x256xf32>
    %138 = vector.extract_strided_slice %25 {offsets = [24, 0], sizes = [8, 1], strides = [1, 1]} : vector<32x1xf32> to vector<8x1xf32>
    %139 = vector.broadcast %134 : vector<8x1xf32> to vector<8x256xf32>
    %140 = arith.mulf %139, %135 : vector<8x256xf32>
    %cst_40 = arith.constant dense<0.000000e+00> : vector<256xf32>
    %141 = vector.multi_reduction <add>, %140, %cst_40 [0] : vector<8x256xf32> to vector<256xf32>
    %142 = vector.shape_cast %141 : vector<256xf32> to vector<1x256xf32>
    %cst_41 = arith.constant 0.353553385 : f32
    %143 = vector.broadcast %cst_41 : f32 to vector<1x256xf32>
    %144 = arith.mulf %142, %143 : vector<1x256xf32>
    %145 = arith.mulf %134, %136 : vector<8x1xf32>
    %cst_42 = arith.constant dense<0.000000e+00> : vector<1xf32>
    %146 = vector.multi_reduction <add>, %145, %cst_42 [0] : vector<8x1xf32> to vector<1xf32>
    %147 = vector.shape_cast %146 : vector<1xf32> to vector<1x1xf32>
    %cst_43 = arith.constant 0.353553385 : f32
    %148 = vector.broadcast %cst_43 : f32 to vector<1x1xf32>
    %149 = arith.mulf %147, %148 : vector<1x1xf32>
    %cst_44 = arith.constant dense<0xFF800000> : vector<1xf32>
    %150 = vector.multi_reduction <maximumf>, %144, %cst_44 [1] : vector<1x256xf32> to vector<1xf32>
    %151 = vector.shape_cast %150 : vector<1xf32> to vector<1x1xf32>
    %152 = arith.maximumf %151, %149 : vector<1x1xf32>
    %153 = vector.broadcast %152 : vector<1x1xf32> to vector<1x256xf32>
    %154 = arith.subf %144, %153 : vector<1x256xf32>
    %155 = math.exp %154 : vector<1x256xf32>
    %156 = arith.subf %149, %152 : vector<1x1xf32>
    %157 = math.exp %156 : vector<1x1xf32>
    %cst_45 = arith.constant dense<0.000000e+00> : vector<1xf32>
    %158 = vector.multi_reduction <add>, %155, %cst_45 [1] : vector<1x256xf32> to vector<1xf32>
    %159 = vector.shape_cast %158 : vector<1xf32> to vector<1x1xf32>
    %160 = arith.addf %157, %159 : vector<1x1xf32>
    %161 = vector.broadcast %155 : vector<1x256xf32> to vector<8x256xf32>
    %162 = arith.mulf %137, %161 : vector<8x256xf32>
    %cst_46 = arith.constant dense<0.000000e+00> : vector<8xf32>
    %163 = vector.multi_reduction <add>, %162, %cst_46 [1] : vector<8x256xf32> to vector<8xf32>
    %164 = vector.shape_cast %163 : vector<8xf32> to vector<8x1xf32>
    %165 = vector.broadcast %157 : vector<1x1xf32> to vector<8x1xf32>
    %166 = arith.mulf %138, %165 : vector<8x1xf32>
    %167 = arith.addf %164, %166 : vector<8x1xf32>
    %168 = vector.broadcast %160 : vector<1x1xf32> to vector<8x1xf32>
    %169 = arith.divf %167, %168 : vector<8x1xf32>
    %170 = tpu.concatenate %61, %97, %133, %169 in 0 : vector<8x1xf32>, vector<8x1xf32>, vector<8x1xf32>, vector<8x1xf32> -> vector<32x1xf32>
    %c0_47 = arith.constant 0 : index
    %c0_48 = arith.constant 0 : index
    %171 = vector.load %arg7[%c0_47, %c0_48] : memref<32x32xf32, #tpu.memory_space<vmem>>, vector<32x32xf32>
    %cst_49 = arith.constant dense<0.000000e+00> : vector<32x1xf32>
    %172 = tpu.matmul %171, %170, %cst_49 {dimension_numbers = #tpu.dot_dimension_numbers<[1], [0], [0], [1], [0, 0, 1, 1], [], []>} : vector<32x32xf32>, vector<32x1xf32>, vector<32x1xf32> -> vector<32x1xf32>
    %c0_50 = arith.constant 0 : index
    %c0_51 = arith.constant 0 : index
    %173 = vector.load %arg8[%c0_50, %c0_51] : memref<32x1xf32, #tpu.memory_space<vmem>>, vector<32x1xf32>
    %174 = arith.addf %172, %173 : vector<32x1xf32>
    %c0_52 = arith.constant 0 : index
    %c0_53 = arith.constant 0 : index
    %c0_54 = arith.constant 0 : index
    %175 = vector.load %arg9[%c0_52, %c0_53, %c0_54] : memref<1x32x1xf32, #tpu.memory_space<vmem>>, vector<1x32x1xf32>
    %176 = vector.shape_cast %175 : vector<1x32x1xf32> to vector<32x1xf32>
    %177 = vector.shape_cast %174 : vector<32x1xf32> to vector<1x32x1xf32>
    tpu.vector_store %arg9[%c0_52, %c0_53, %c0_54], %177 {strides = array<i32>} : memref<1x32x1xf32, #tpu.memory_space<vmem>>, vector<1x32x1xf32>,
    return
  }
  func.func @transform_0(%arg0: i32) -> (i32, i32, i32) {
    %c0_i32 = arith.constant 0 : i32
    %c0_i32_0 = arith.constant 0 : i32
    %c0_i32_1 = arith.constant 0 : i32
    return %arg0, %c0_i32, %c0_i32_0 : i32, i32, i32
  }
  func.func @transform_1(%arg0: i32) -> (i32, i32) {
    %c0_i32 = arith.constant 0 : i32
    %c0_i32_0 = arith.constant 0 : i32
    %c0_i32_1 = arith.constant 0 : i32
    return %c0_i32, %c0_i32_0 : i32, i32
  }
  func.func @transform_2(%arg0: i32) -> (i32, i32) {
    %c0_i32 = arith.constant 0 : i32
    %c0_i32_0 = arith.constant 0 : i32
    %c0_i32_1 = arith.constant 0 : i32
    return %c0_i32, %c0_i32_0 : i32, i32
  }
  func.func @transform_3(%arg0: i32) -> (i32, i32) {
    %c0_i32 = arith.constant 0 : i32
    %c0_i32_0 = arith.constant 0 : i32
    %c0_i32_1 = arith.constant 0 : i32
    return %c0_i32, %c0_i32_0 : i32, i32
  }
  func.func @transform_4(%arg0: i32) -> (i32, i32) {
    %c0_i32 = arith.constant 0 : i32
    %c0_i32_0 = arith.constant 0 : i32
    %c0_i32_1 = arith.constant 0 : i32
    return %c0_i32, %c0_i32_0 : i32, i32
  }
  func.func @transform_5(%arg0: i32) -> (i32, i32) {
    %c0_i32 = arith.constant 0 : i32
    %c0_i32_0 = arith.constant 0 : i32
    %c0_i32_1 = arith.constant 0 : i32
    return %c0_i32, %c0_i32_0 : i32, i32
  }
  func.func @transform_6(%arg0: i32) -> (i32, i32) {
    %c0_i32 = arith.constant 0 : i32
    %c0_i32_0 = arith.constant 0 : i32
    %c0_i32_1 = arith.constant 0 : i32
    return %c0_i32, %c0_i32_0 : i32, i32
  }
  func.func @transform_7(%arg0: i32) -> (i32, i32) {
    %c0_i32 = arith.constant 0 : i32
    %c0_i32_0 = arith.constant 0 : i32
    %c0_i32_1 = arith.constant 0 : i32
    return %c0_i32, %c0_i32_0 : i32, i32
  }
  func.func @transform_8(%arg0: i32) -> (i32, i32, i32) {
    %c0_i32 = arith.constant 0 : i32
    %c0_i32_0 = arith.constant 0 : i32
    %c0_i32_1 = arith.constant 0 : i32
    return %arg0, %c0_i32, %c0_i32_0 : i32, i32, i32
  }
}

</mosaic_0001>

<bundles_post_ra>
// kernel: tpu_custom_call.1
= control target key start
LH: loop header
LB: loop body
LE: loop exit
PB: predicated region body
PF: predicated region fallthrough
CT: control target
= control target key end

     0   :  { %13 = vsyncpa [#allocation3], 0  ;;  %s1489_s27 = smov 0   ;;  %s1817_s0 = inlined_call_operand.vmem [shape: f32[2,32,256], index: 0, kind: input, shape index: {}]   ;;  %s1818_s1 = inlined_call_operand.vmem [shape: f32[32,1], index: 1, kind: input, shape index: {}]   ;;  %s1819_s2 = inlined_call_operand.vmem [shape: f32[32,256], index: 2, kind: input, shape index: {}]   ;;  %s1820_s3 = inlined_call_operand.vmem [shape: f32[32,32], index: 3, kind: input, shape index: {}]   ;;  %s1821_s4 = inlined_call_operand.vmem [shape: f32[64,32], index: 4, kind: input, shape index: {}]   ;;  %s1822_s5 = inlined_call_operand.vmem [shape: f32[96,1], index: 5, kind: input, shape index: {}]   ;;  %s1823_s6 = inlined_call_operand.hbm [shape: f32[32,32], index: 6, kind: input, shape index: {}]   ;;  %s1824_s7 = inlined_call_operand.vmem [shape: f32[32,1], index: 7, kind: input, shape index: {}]   ;;  %s1825_s8 = inlined_call_operand.vmem [shape: f32[2,32,1], index: 8, kind: output, shape index: {}]  }
   0x1 LB: > { %s1495_s28 = sadd.s32 4294967295, %s1437_s27   ;;  %p1197_p0 = scmp.ge.s32.totalorder %s1437_s27, 1  ;;  %s1437_s27 = sphi %s1489_s27, %s19_s27  }
   0x2   : > { %p223_p1 = scmp.lt.s32.totalorder %s1437_s27, 3  ;;  %s1439_s29 = smov [#allocation2]  }
   0x3   : > { %s250_s30 = sshll.u32 %s1439_s29, 4  ;;  %p1826_p3 = scmp.eq.s32.totalorder %s1495_s28, 0  ;;  %s251_s30 = int_to_ptr.vmem [resolvable:$true] %s250_s30 }
   0x4   : > { %p1499_p2 = pnand %p1197_p0, %p223_p1  ;;  %s1399_s13 = scalar_lea.hbm %s1823_s6, 512 }
   0x5   : > { %p1400_p6 = scmp.ne.s32.totalorder %s1823_s6, %s1399_s13  ;;  %p1406_p10 = scmp.lt.u32.totalorder %s1399_s13, %s1823_s6 }
   0x6   : > { %s1828_s9 = scalar_select %p1499_p2, 1, 0 }
   0x7   : > { %p1346_p4 = pneg %p1499_p2 }
   0x9   : > { %p1508_p5 = pnand %p1826_p3, %p1346_p4 }
   0xb   : > { %p1401_p7 = pneg %p1508_p5 }
   0xd   : > { %p1402_p8 = pnand %p1401_p7, %p1400_p6 }
   0xf   : > { %p1403_p9 = pneg %p1402_p8 }
  0x11   : > { %p1408_p11 = pnand %p1406_p10, %p1403_p9 }
  0x13   : > { %1411 = shalt.err (!%p1408_p11)
}
  0x14   : > { %s1412_s18 = scalar_lea.vmem %s251_s30, 512  ;;  %p1420_p1 = scmp.lt.s32.totalorder %s251_s30, %s251_s30 }
  0x15   : > { %p1413_p12 = scmp.ne.s32.totalorder %s251_s30, %s1412_s18  ;;  %p1421_p4 = scmp.lt.s32.totalorder %s1412_s18, %s1412_s18 }
  0x17   : > { %p1415_p13 = pnand %p1413_p12, %p1401_p7  ;;  %p1422_p3 = por %p1421_p4, %p1420_p1 }
  0x19   : > { %p1416_p0 = pneg %p1415_p13 }
  0x1b   : > { %p1423_p2 = pnand %p1422_p3, %p1416_p0 }
  0x1d   : > { %1426 = shalt.err (!%p1423_p2)
}
  0x1e   : > { %s1440_s19 = smov 128   ;;  %s1441_s20 = smov 8  }
  0x1f   : > { %1349 = dma.hbm_to_vmem [thread:$0]  (!%p1508_p5), %s1823_s6, 512, %s251_s30, [#allocation3], %s1440_s19, %s1440_s19, %s1441_s20  }
  0x20   : > { %p1830_p6 = scmp.ne.s32.totalorder %s1828_s9, 0 }
  0x21   : > { %p1831_p8 = scmp.eq.s32.totalorder (!%p1830_p6), %s1495_s28, 0 }
  0x22   : > { %277 = sbr.rel (%p1830_p6) target bundleno = 1272 (0x4f8), region = 52 }
  0x29   : > { %1432 = dma.done.wait (%p1831_p8), [#allocation3], 512   ;;  %p1832_p7 = pmov %p1831_p8 }
  0x2a   : > { %p311_p2 = scmp.lt.s32.totalorder %s1495_s28, 1  ;;  %v382_v12 = vld [vmem:[%s1821_s4] sm:$0xff]  ;;  %vm430_vm0 = vcmask 261120   ;;  %v359_v13 = vld [vmem:[%s1819_s2 + $0x28] sm:$0xff]  ;;  %v361_v15 = vld [vmem:[%s1819_s2 + $0x38] sm:$0xff]  ;;  %v1442_v27 = vmov 0.0  }
  0x2b   : > { %1434 = vsyncadd (%p1832_p7), [#allocation3], 4294966784  ;;  %1270 = vmatprep.mubr.msk.f32.mxu1 %vm430_vm0, %v382_v12  ;;  %v354_v14 = vld [vmem:[%s1819_s2] sm:$0xff]  ;;  %v360_v19 = vld [vmem:[%s1819_s2 + $0x30] sm:$0xff]  ;;  %519 = vmatprep.mubr.f32.mxu0 %v1442_v27  ;;  %v1443_v28 = vmov 0   ;;  %vm796_vm1 = vcmask 7168  }
  0x2c   : > { %s1834_s28 = smov (!%p311_p2, %s1495_s28), 1  ;;  %v358_v16 = vld [vmem:[%s1819_s2 + $0x20] sm:$0xff]  ;;  %v355_v21 = vld [vmem:[%s1819_s2 + $0x8] sm:$0xff]  ;;  %v357_v22 = vld [vmem:[%s1819_s2 + $0x18] sm:$0xff]  ;;  %1366 = vset.pattern.permute.xlu1 %v1443_v28  ;;  %1365 = vset.pattern.permute.xlu0 %v1443_v28 }
  0x2d   : > { %s1232_s23 = sshll.u32 %s1834_s28, 6  ;;  %v356_v23 = vld [vmem:[%s1819_s2 + $0x10] sm:$0xff]  ;;  %v1573_v29 = vld [vmem:[%s1822_s5 + $0x20] sm:$0xff]  ;;  %v1579_v32 = vld [vmem:[%s1822_s5 + $0x28] sm:$0xff]  ;;  %s1233_s19 = sshll.u32 %s1834_s28, 5 }
  0x2e   : > { %s315_s26 = scalar_lea.vmem %s1817_s0, %s1232_s23  ;;  %v383_v37 = vld [vmem:[%s1821_s4 + $0x8] sm:$0xff]  ;;  %v384_v38 = vld [vmem:[%s1821_s4 + $0x10] sm:$0xff]  ;;  %v385_v39 = vld [vmem:[%s1821_s4 + $0x18] sm:$0xff] }
  0x2f   : > { %v325_v0 = vld [vmem:[%s315_s26 + $0x20] sm:$0xff]  ;;  %v326_v1 = vld [vmem:[%s315_s26 + $0x28] sm:$0xff]  ;;  %v327_v6 = vld [vmem:[%s315_s26 + $0x30] sm:$0xff] }
  0x30   : > { %v335_v2 = vadd.f32 %v326_v1, %v325_v0  ;;  %v321_v3 = vld [vmem:[%s315_s26] sm:$0xff]  ;;  %v322_v4 = vld [vmem:[%s315_s26 + $0x8] sm:$0xff]  ;;  %v328_v7 = vld [vmem:[%s315_s26 + $0x38] sm:$0xff]  ;;  %v367_v17 = vadd.f32 %v359_v13, %v326_v1  ;;  %v366_v30 = vadd.f32 %v358_v16, %v325_v0  ;;  %v368_v31 = vadd.f32 %v360_v19, %v327_v6 }
  0x31   : > { %v329_v5 = vadd.f32 %v322_v4, %v321_v3  ;;  %v338_v8 = vadd.f32 %v328_v7, %v327_v6  ;;  %v323_v9 = vld [vmem:[%s315_s26 + $0x10] sm:$0xff]  ;;  %v324_v10 = vld [vmem:[%s315_s26 + $0x18] sm:$0xff]  ;;  %v362_v18 = vadd.f32 %v354_v14, %v321_v3  ;;  %v369_v20 = vadd.f32 %v361_v15, %v328_v7  ;;  %v386_v40 = vld [vmem:[%s1821_s4 + $0x20] sm:$0xff]  ;;  %s320_s26 = scalar_lea.vmem %s1825_s8, %s1233_s19 }
  0x32   : > { %336 = vadd.xlane.f32.xlu1 %v335_v2  ;;  %v332_v11 = vadd.f32 %v324_v10, %v323_v9  ;;  %v363_v24 = vadd.f32 %v355_v21, %v322_v4  ;;  %v365_v25 = vadd.f32 %v357_v22, %v324_v10  ;;  %v364_v26 = vadd.f32 %v356_v23, %v323_v9  ;;  %v387_v41 = vld [vmem:[%s1821_s4 + $0x28] sm:$0xff]  ;;  %v388_v42 = vld [vmem:[%s1821_s4 + $0x30] sm:$0xff]  ;;  %v389_v43 = vld [vmem:[%s1821_s4 + $0x38] sm:$0xff] }
  0x33   : > { %330 = vadd.xlane.f32.xlu0 %v329_v5  ;;  %v1314_v35 = vpack.c.bf16 %v369_v20, %v367_v17  ;;  %v1316_v36 = vpack.c.bf16 %v368_v31, %v366_v30  ;;  %v348_v46 = vld [vmem:[%s1818_s1 + $0x10] sm:$0xff]  ;;  %v346_v50 = vld [vmem:[%s1818_s1] sm:$0xff]  ;;  %v349_v51 = vld [vmem:[%s1818_s1 + $0x18] sm:$0xff] }
  0x34   : > { %v1310_v33 = vpack.c.bf16 %v365_v25, %v363_v24  ;;  %v1312_v34 = vpack.c.bf16 %v364_v26, %v362_v18  ;;  %v347_v53 = vld [vmem:[%s1818_s1 + $0x8] sm:$0xff]  ;;  %v673_v62 = vld [vmem:[%s1820_s3] sm:$0xff]  ;;  %v675_v0 = vld [vmem:[%s1820_s3 + $0x10] sm:$0xff] }
  0x35   : > { %v674_v63 = vld [vmem:[%s1820_s3 + $0x8] sm:$0xff]  ;;  %v676_v1 = vld [vmem:[%s1820_s3 + $0x18] sm:$0xff]  ;;  %v376_v3 = vld [vmem:[%s1822_s5 + $0x30] sm:$0xff] }
  0x36   : > { %339 = vadd.xlane.f32.xlu1 %v338_v8  ;;  %1311 = vmatprep.subr.bf16.mxu0 %v1310_v33  ;;  %v377_v2 = vld [vmem:[%s1822_s5 + $0x38] sm:$0xff]  ;;  %v371_v20 = vld [vmem:[%s1822_s5 + $0x8] sm:$0xff]  ;;  %v370_v21 = vld [vmem:[%s1822_s5] sm:$0xff] }
  0x37   : > { %333 = vadd.xlane.f32.xlu0 %v332_v11  ;;  %1313 = vmatpush1.bf16.msra.mxu0 %v1312_v34  ;;  %v373_v28 = vld [vmem:[%s1822_s5 + $0x18] sm:$0xff]  ;;  %v372_v31 = vld [vmem:[%s1822_s5 + $0x10] sm:$0xff] }
  0x38   : > { %1315 = vmatprep.subr.bf16.mxu0 %v1314_v35 }
  0x3b   : > { %1317 = vmatpush1.bf16.msra.mxu0 %v1316_v36 }
  0x3e   : > { %1206 = vmatmul.mubr.msk.f32.vlgmr.msra.gmra.mrb[0].mxu0 %vm430_vm0, %v382_v12 }
  0x3f   : > { %525 = vmatprep.mubr.f32.mxu0 %v1442_v27 }
  0x42   : > { %1207 = vmatmul.mubr.msk.f32.gmra.mrb[2].mxu0 %vm430_vm0, %v383_v37 }
  0x43   : > { %531 = vmatprep.mubr.f32.mxu0 %v1442_v27 }
  0x46   : > { %1208 = vmatmul.mubr.msk.f32.gmra.mrb[4].mxu0 %vm430_vm0, %v384_v38 }
  0x47   : > { %392 = vperm.xlu1 %1366, %v1573_v29   ;;  %537 = vmatprep.mubr.f32.mxu0 %v1442_v27 }
  0x4a   : > { %1209 = vmatmul.mubr.msk.f32.gmra.mrb[6].mxu0 %vm430_vm0, %v385_v39 }
  0x4b   : > { %543 = vmatprep.mubr.f32.mxu0 %v1442_v27  ;;  %407 = vperm.xlu1 %1366, %v377_v2  }
  0x4d   : > { %397 = vperm.xlu0 %1365, %v1579_v32  }
  0x4e   : > { %1210 = vmatmul.mubr.msk.f32.gmra.mrb[8].mxu0 %vm430_vm0, %v386_v40 }
  0x4f   : > { %549 = vmatprep.mubr.f32.mxu0 %v1442_v27  ;;  %402 = vperm.xlu1 %1366, %v376_v3  }
  0x52   : > { %1211 = vmatmul.mubr.msk.f32.gmra.mrb[10].mxu0 %vm430_vm0, %v387_v41 }
  0x53   : > { %555 = vmatprep.mubr.f32.mxu0 %v1442_v27 }
  0x56   : > { %1212 = vmatmul.mubr.msk.f32.gmra.mrb[12].mxu0 %vm430_vm0, %v388_v42 }
  0x57   : > { %561 = vmatprep.mubr.f32.mxu0 %v1442_v27 }
  0x5a   : > { %1213 = vmatmul.mubr.msk.f32.gmra.mrb[14].mxu0 %vm430_vm0, %v389_v43 }
  0xbf   : > { %v337_v44 = vpop.xlane.xlu1 %336 }
  0xc0   : > { %v331_v45 = vpop.xlane.xlu0 %330  ;;  %v344_v47 = vmul.f32 0.00390625, %v337_v44 }
  0xc1   : > { %v342_v48 = vmul.f32 0.00390625, %v331_v45 }
  0xc2   : > { %v352_v56 = vadd.f32 %v348_v46, %v344_v47 }
  0xc3   : > { %v340_v49 = vpop.xlane.xlu1 %339  ;;  %v350_v57 = vadd.f32 %v346_v50, %v342_v48 }
  0xc4   : > { %v345_v52 = vmul.f32 0.00390625, %v340_v49  ;;  %v334_v54 = vpop.xlane.xlu0 %333 }
  0xc5   : > { %v343_v55 = vmul.f32 0.00390625, %v334_v54 }
  0xc6   : > { %v353_v58 = vadd.f32 %v349_v51, %v345_v52 }
  0xc7   : > { %v351_v59 = vadd.f32 %v347_v53, %v343_v55 }
  0xc8   : > { %v1322_v61 = vpack.c.bf16 %v353_v58, %v352_v56 }
  0xc9   : > { %v1318_v60 = vpack.c.bf16 %v351_v59, %v350_v57 }
  0xcb   : > { %1319 = vmatprep.subr.bf16.mxu1 %v1318_v60 }
  0xcc   : > { %1321 = vmatpush3.bf16.msra.mxu1 %v1318_v60 }
  0xcd   : > { %1323 = vmatprep.subr.bf16.mxu1 %v1322_v61 }
  0xd0   : > { %1325 = vmatpush3.bf16.msra.mxu1 %v1322_v61 }
  0xd1   : > { %1327 = vmatprep.subr.bf16.mxu1 %v1318_v60 }
  0xd3   : > { %1271 = vmatmul.mubr.msk.f32.vlgmr.msra.gmra.mrb[0].mxu1 %vm430_vm0, %v383_v37 }
  0xd4   : > { %1329 = vmatpush3.bf16.msra.mxu1 %v1318_v60  ;;  %1273 = vmatprep.mubr.msk.f32.mxu1 %vm430_vm0, %v384_v38 }
  0xd5   : > { %1331 = vmatprep.subr.bf16.mxu1 %v1322_v61 }
  0xd7   : > { %1274 = vmatmul.mubr.msk.f32.gmra.mrb[2].mxu1 %vm430_vm0, %v385_v39 }
  0xd8   : > { %1333 = vmatpush3.bf16.msra.mxu1 %v1322_v61  ;;  %1276 = vmatprep.mubr.msk.f32.mxu1 %vm430_vm0, %v386_v40  ;;  %v393_v40 = vpop.permute.xlu1 %392 }
  0xdb   : > { %1277 = vmatmul.mubr.msk.f32.gmra.mrb[4].mxu1 %vm430_vm0, %v387_v41 }
  0xdc   : > { %1279 = vmatprep.mubr.msk.f32.mxu1 %vm430_vm0, %v388_v42  ;;  %v408_v41 = vpop.permute.xlu1 %407  ;;  %v398_v42 = vpop.permute.xlu0 %397 }
  0xdf   : > { %1280 = vmatmul.mubr.msk.f32.gmra.mrb[6].mxu1 %vm430_vm0, %v389_v43 }
  0xe0   : > { %1290 = vmatprep.mubr.msk.f32.mxu1 %vm430_vm0, %v673_v62  ;;  %v403_v43 = vpop.permute.xlu1 %402 }
  0xe3   : > { %1291 = vmatmul.mubr.msk.f32.vlgmr.msra.gmra.mrb[8].mxu1 %vm430_vm0, %v674_v63 }
  0xe4   : > { %1293 = vmatprep.mubr.msk.f32.mxu1 %vm430_vm0, %v675_v0 }
  0xe7   : > { %1294 = vmatmul.mubr.msk.f32.gmra.mrb[10].mxu1 %vm430_vm0, %v676_v1 }
 0x111   : > { %v521_v4 = vpop.f32.mrb[0].mxu0 }
 0x112   : > { %v523_v5 = vpop.f32.mrb[1].mxu0  ;;  %v522_v49 = vadd.f32 %v521_v4, %v393_v40 }
 0x113   : > { %v524_v50 = vadd.f32 %v523_v5, %v393_v40 }
 0x115   : > { %v527_v6 = vpop.f32.mrb[2].mxu0 }
 0x116   : > { %v529_v7 = vpop.f32.mrb[3].mxu0  ;;  %v528_v44 = vadd.f32 %v527_v6, %v398_v42 }
 0x117   : > { %v530_v45 = vadd.f32 %v529_v7, %v398_v42 }
 0x119   : > { %v533_v8 = vpop.f32.mrb[4].mxu0 }
 0x11a   : > { %v535_v9 = vpop.f32.mrb[5].mxu0  ;;  %v534_v62 = vadd.f32 %v533_v8, %v403_v43 }
 0x11b   : > { %v536_v63 = vadd.f32 %v535_v9, %v403_v43 }
 0x11d   : > { %v1652_v10 = vpop.f32.mrb[6].mxu0 }
 0x11e   : > { %v1654_v11 = vpop.f32.mrb[7].mxu0  ;;  %v540_v4 = vadd.f32 %v1652_v10, %v408_v41 }
 0x11f   : > { %v542_v5 = vadd.f32 %v1654_v11, %v408_v41 }
 0x1a6   : > { %v1272_v12 = vpop.f32.mrb[0].mxu1 }
 0x1a7   : > { %v634_v13 = vpop.f32.mrb[1].mxu1  ;;  %v640_v23 = vadd.f32 %v1272_v12, %v1579_v32 }
 0x1a8   : > { %v635_v26 = vadd.f32 %v634_v13, %v1573_v29 }
 0x1aa   : > { %v1275_v14 = vpop.f32.mrb[2].mxu1 }
 0x1ab   : > { %v644_v15 = vpop.f32.mrb[3].mxu1  ;;  %v650_v32 = vadd.f32 %v1275_v14, %v377_v2 }
 0x1ac   : > { %v645_v37 = vadd.f32 %v644_v15, %v376_v3 }
 0x1ae   : > { %v1656_v16 = vpop.f32.mrb[4].mxu1 }
 0x1af   : > { %v1658_v17 = vpop.f32.mrb[5].mxu1 }
 0x1b2   : > { %v1660_v18 = vpop.f32.mrb[6].mxu1 }
 0x1b3   : > { %v1662_v19 = vpop.f32.mrb[7].mxu1 }
 0x1b6   : > { %v1292_v22 = vpop.f32.mrb[8].mxu1 }
 0x1b7   : > { %v761_v24 = vadd.f32 %v1292_v22, %v371_v20  ;;  %v755_v25 = vpop.f32.mrb[9].mxu1 }
 0x1b8   : > { %v756_v27 = vadd.f32 %v755_v25, %v370_v21 }
 0x1b9   : > { %v1675_v30 = vmul.f32 %v761_v24, %v640_v23  ;;  %838 = vperm.xlu1 %1366, %v761_v24  }
 0x1ba   : > { %v1680_v33 = vmul.f32 %v756_v27, %v635_v26  ;;  %v1295_v34 = vpop.f32.mrb[10].mxu1 }
 0x1bb   : > { %v771_v35 = vadd.f32 %v1295_v34, %v373_v28  ;;  %v765_v36 = vpop.f32.mrb[11].mxu1 }
 0x1bc   : > { %v766_v29 = vadd.f32 %v765_v36, %v372_v31 }
 0x1bd   : > { %v1682_v38 = vmul.f32 %v771_v35, %v650_v32  ;;  %776 = vperm.xlu1 %1366, %v756_v27  }
 0x1be   : > { %v1684_v39 = vmul.f32 %v766_v29, %v645_v37 }
 0x1c1   : > { %899 = vperm.xlu1 %1366, %v766_v29  }
 0x1c5   : > { %960 = vperm.xlu1 %1366, %v771_v35  }
 0x238   : > { %v839_v46 = vpop.permute.xlu1 %838 }
 0x239   : > { %v841_v47 = vmul.f32 %v839_v46, %v528_v44  ;;  %v842_v48 = vmul.f32 %v839_v46, %v530_v45 }
 0x23b   : > { %v843_v51 = vrot.slane %v841_v47, 4  ;;  %v849_v52 = vrot.slane %v842_v48, 4 }
 0x23c   : > { %v777_v53 = vpop.permute.xlu1 %776 }
 0x23d   : > { %v844_v54 = vadd.f32 %v843_v51, %v841_v47  ;;  %v850_v55 = vadd.f32 %v849_v52, %v842_v48  ;;  %v779_v56 = vmul.f32 %v777_v53, %v522_v49  ;;  %v780_v57 = vmul.f32 %v777_v53, %v524_v50 }
 0x23f   : > { %v845_v58 = vrot.slane %v844_v54, 2  ;;  %v851_v59 = vrot.slane %v850_v55, 2  ;;  %v781_v60 = vrot.slane %v779_v56, 4  ;;  %v787_v61 = vrot.slane %v780_v57, 4 }
 0x240   : > { %v900_v0 = vpop.permute.xlu1 %899 }
 0x241   : > { %v846_v1 = vadd.f32 %v845_v58, %v844_v54  ;;  %v852_v2 = vadd.f32 %v851_v59, %v850_v55  ;;  %v782_v3 = vadd.f32 %v781_v60, %v779_v56  ;;  %v788_v6 = vadd.f32 %v787_v61, %v780_v57 }
 0x242   : > { %v902_v7 = vmul.f32 %v900_v0, %v534_v62  ;;  %v903_v12 = vmul.f32 %v900_v0, %v536_v63 }
 0x243   : > { %v783_v13 = vrot.slane %v782_v3, 2  ;;  %v789_v14 = vrot.slane %v788_v6, 2  ;;  %v847_v15 = vrot.slane %v846_v1, 1  ;;  %v853_v20 = vrot.slane %v852_v2, 1 }
 0x244   : > { %v904_v21 = vrot.slane %v902_v7, 4  ;;  %v910_v22 = vrot.slane %v903_v12, 4  ;;  %v961_v23 = vpop.permute.xlu1 %960 }
 0x245   : > { %v784_v8 = vadd.f32 %v783_v13, %v782_v3  ;;  %v790_v9 = vadd.f32 %v789_v14, %v788_v6  ;;  %v963_v24 = vmul.f32 %v961_v23, %v540_v4  ;;  %v964_v25 = vmul.f32 %v961_v23, %v542_v5 }
 0x246   : > { %v905_v26 = vadd.f32 %v904_v21, %v902_v7  ;;  %v911_v27 = vadd.f32 %v910_v22, %v903_v12  ;;  %v848_v28 = vadd.f32 %v847_v15, %v846_v1  ;;  %v854_v31 = vadd.f32 %v853_v20, %v852_v2 }
 0x247   : > { %v965_v10 = vrot.slane %v963_v24, 4  ;;  %v971_v34 = vrot.slane %v964_v25, 4  ;;  %v785_v11 = vrot.slane %v784_v8, 1  ;;  %v791_v32 = vrot.slane %v790_v9, 1 }
 0x248   : > { %v906_v35 = vrot.slane %v905_v26, 2  ;;  %v912_v36 = vrot.slane %v911_v27, 2  ;;  %v1688_v37 = vmul.f32 0.35355338, %v848_v28  ;;  %v1690_v29 = vmul.f32 0.35355338, %v854_v31 }
 0x249   : > { %v966_v40 = vadd.f32 %v965_v10, %v963_v24  ;;  %v972_v41 = vadd.f32 %v971_v34, %v964_v25  ;;  %v786_v42 = vadd.f32 %v785_v11, %v784_v8  ;;  %v792_v43 = vadd.f32 %v791_v32, %v790_v9 }
 0x24a   : > { %v907_v44 = vadd.f32 %v906_v35, %v905_v26  ;;  %v913_v45 = vadd.f32 %v912_v36, %v911_v27  ;;  %v866_v46 = vmax.f32 %v1688_v37, %v1690_v29  ;;  %v858_v6 = vsel %vm796_vm1, %v1675_v30, 0.0 }
 0x24b   : > { %v967_v47 = vrot.slane %v966_v40, 2  ;;  %v973_v48 = vrot.slane %v972_v41, 2  ;;  %v1694_v49 = vmul.f32 0.35355338, %v786_v42  ;;  %v1696_v50 = vmul.f32 0.35355338, %v792_v43 }
 0x24c   : > { %867 = vmax.xlane.f32.xlu0 %v866_v46  ;;  %v908_v51 = vrot.slane %v907_v44, 1  ;;  %v914_v52 = vrot.slane %v913_v45, 1  ;;  %v859_v4 = vrot.slane %v858_v6, 4  ;;  %v797_v5 = vsel %vm796_vm1, %v1680_v33, 0.0 }
 0x24d   : > { %v968_v53 = vadd.f32 %v967_v47, %v966_v40  ;;  %v974_v54 = vadd.f32 %v973_v48, %v972_v41  ;;  %v805_v55 = vmax.f32 %v1694_v49, %v1696_v50  ;;  %v798_v7 = vrot.slane %v797_v5, 4 }
 0x24e   : > { %v909_v56 = vadd.f32 %v908_v51, %v907_v44  ;;  %v915_v57 = vadd.f32 %v914_v52, %v913_v45  ;;  %v860_v12 = vadd.f32 %v859_v4, %v858_v6  ;;  %v919_v13 = vsel %vm796_vm1, %v1684_v39, 0.0  ;;  %v378_v4 = vld [vmem:[%s1822_s5 + $0x40] sm:$0xff] }
 0x24f   : > { %806 = vmax.xlane.f32.xlu1 %v805_v55  ;;  %v969_v58 = vrot.slane %v968_v53, 1  ;;  %v975_v59 = vrot.slane %v974_v54, 1  ;;  %v799_v14 = vadd.f32 %v798_v7, %v797_v5  ;;  %v980_v15 = vsel %vm796_vm1, %v1682_v38, 0.0 }
 0x250   : > { %v1700_v60 = vmul.f32 0.35355338, %v909_v56  ;;  %v1702_v61 = vmul.f32 0.35355338, %v915_v57  ;;  %v920_v20 = vrot.slane %v919_v13, 4  ;;  %v861_v21 = vrot.slane %v860_v12, 2 }
 0x251   : > { %v970_v62 = vadd.f32 %v969_v58, %v968_v53  ;;  %v976_v63 = vadd.f32 %v975_v59, %v974_v54  ;;  %v981_v22 = vrot.slane %v980_v15, 4  ;;  %v800_v23 = vrot.slane %v799_v14, 2  ;;  %v1720_v57 = vpop.f32.mrb[8].mxu0  ;;  %v379_v58 = vld [vmem:[%s1822_s5 + $0x48] sm:$0xff] }
 0x252   : > { %v927_v0 = vmax.f32 %v1700_v60, %v1702_v61  ;;  %v921_v8 = vadd.f32 %v920_v20, %v919_v13  ;;  %v862_v9 = vadd.f32 %v861_v21, %v860_v12  ;;  %v660_v6 = vadd.f32 %v1656_v16, %v379_v58 }
 0x253   : > { %v1706_v1 = vmul.f32 0.35355338, %v970_v62  ;;  %v1708_v2 = vmul.f32 0.35355338, %v976_v63  ;;  %v982_v30 = vadd.f32 %v981_v22, %v980_v15  ;;  %v801_v24 = vadd.f32 %v800_v23, %v799_v14  ;;  %v1725_v62 = vpop.f32.mrb[9].mxu0  ;;  %v381_v14 = vld [vmem:[%s1822_s5 + $0x58] sm:$0xff] }
 0x254   : > { %928 = vmax.xlane.f32.xlu0 %v927_v0  ;;  %v863_v25 = vrot.slane %v862_v9, 1  ;;  %v922_v26 = vrot.slane %v921_v8, 2  ;;  %v551_v0 = vpop.f32.mrb[10].mxu0  ;;  %v655_v20 = vadd.f32 %v1658_v17, %v378_v4  ;;  %v380_v23 = vld [vmem:[%s1822_s5 + $0x50] sm:$0xff]  ;;  %v670_v17 = vadd.f32 %v1660_v18, %v381_v14 }
 0x255   : > { %v988_v3 = vmax.f32 %v1706_v1, %v1708_v2  ;;  %v802_v33 = vrot.slane %v801_v24, 1  ;;  %v983_v27 = vrot.slane %v982_v30, 2 }
 0x256   : > { %v864_v28 = vadd.f32 %v863_v25, %v862_v9  ;;  %v923_v31 = vadd.f32 %v922_v26, %v921_v8  ;;  %v665_v9 = vadd.f32 %v1662_v19, %v380_v23 }
 0x257   : > { %989 = vmax.xlane.f32.xlu1 %v988_v3  ;;  %v803_v10 = vadd.f32 %v802_v33, %v801_v24  ;;  %v984_v39 = vadd.f32 %v983_v27, %v982_v30  ;;  %v553_v3 = vpop.f32.mrb[11].mxu0 }
 0x258   : > { %v865_v34 = vmul.f32 0.35355338, %v864_v28  ;;  %v924_v11 = vrot.slane %v923_v31, 1  ;;  %v1731_v7 = vpop.f32.mrb[12].mxu0 }
 0x259   : > { %v804_v35 = vmul.f32 0.35355338, %v803_v10  ;;  %v985_v36 = vrot.slane %v984_v39, 1  ;;  %v1735_v13 = vpop.f32.mrb[13].mxu0 }
 0x25a   : > { %v925_v42 = vadd.f32 %v924_v11, %v923_v31  ;;  %v1740_v15 = vpop.f32.mrb[14].mxu0 }
 0x25b   : > { %v986_v46 = vadd.f32 %v985_v36, %v984_v39  ;;  %v1746_v21 = vpop.f32.mrb[15].mxu0 }
 0x25c   : > { %v926_v47 = vmul.f32 0.35355338, %v925_v42 }
 0x25d   : > { %v987_v53 = vmul.f32 0.35355338, %v986_v46 }
 0x2d9   : > { %v868_v32 = vpop.xlane.xlu0 %867 }
 0x2da   : > { %v869_v38 = vmax.f32 %v868_v32, %v865_v34 }
 0x2dc   : > { %v881_v40 = vsub.f32 %v865_v34, %v869_v38  ;;  %872 = vperm.xlu1 %1366, %v869_v38   ;;  %v807_v41 = vpop.xlane.xlu1 %806 }
 0x2dd   : > { %v808_v43 = vmax.f32 %v807_v41, %v804_v35 }
 0x2de   : > { %v882_v44 = vmul.f32 1.442695, %v881_v40 }
 0x2df   : > { %v820_v45 = vsub.f32 %v804_v35, %v808_v43  ;;  %811 = vperm.xlu0 %1365, %v808_v43  }
 0x2e0   : > { %1367 = vpow2.f32 %v882_v44 }
 0x2e1   : > { %v821_v48 = vmul.f32 1.442695, %v820_v45  ;;  %v929_v51 = vpop.xlane.xlu0 %928 }
 0x2e2   : > { %v930_v52 = vmax.f32 %v929_v51, %v926_v47 }
 0x2e3   : > { %1369 = vpow2.f32 %v821_v48 }
 0x2e4   : > { %v942_v54 = vsub.f32 %v926_v47, %v930_v52  ;;  %933 = vperm.xlu1 %1366, %v930_v52   ;;  %v990_v55 = vpop.xlane.xlu1 %989 }
 0x2e5   : > { %v991_v56 = vmax.f32 %v990_v55, %v987_v53 }
 0x2e6   : > { %v943_v59 = vmul.f32 1.442695, %v942_v54 }
 0x2e7   : > { %v1003_v63 = vsub.f32 %v987_v53, %v991_v56  ;;  %994 = vperm.xlu0 %1365, %v991_v56  }
 0x2e8   : > { %1371 = vpow2.f32 %v943_v59  ;;  %417 = vperm.xlu1 %1366, %v379_v58  }
 0x2e9   : > { %v1004_v5 = vmul.f32 1.442695, %v1003_v63 }
 0x2ea   : > { %v1733_v12 = vpop.eup %1367 }
 0x2eb   : > { %1373 = vpow2.f32 %v1004_v5  ;;  %412 = vperm.xlu0 %1365, %v378_v4   ;;  %v1743_v16 = vmul.f32 %v1733_v12, %v660_v6 }
 0x2ec   : > { %427 = vperm.xlu1 %1366, %v381_v14  }
 0x2ed   : > { %v1748_v22 = vpop.eup %1369 }
 0x2ee   : > { %v1754_v8 = vmul.f32 %v1748_v22, %v655_v20 }
 0x2ef   : > { %422 = vperm.xlu0 %1365, %v380_v23  }
 0x2f2   : > { %v1757_v30 = vpop.eup %1371 }
 0x2f3   : > { %v1760_v24 = vmul.f32 %v1757_v30, %v665_v9 }
 0x2f5   : > { %v1763_v25 = vpop.eup %1373 }
 0x2f6   : > { %v1766_v26 = vmul.f32 %v1763_v25, %v670_v17 }
 0x35b   : > { %v873_v33 = vpop.permute.xlu1 %872 }
 0x35c   : > { %v875_v27 = vsub.f32 %v1688_v37, %v873_v33  ;;  %v876_v28 = vsub.f32 %v1690_v29, %v873_v33 }
 0x35e   : > { %v877_v31 = vmul.f32 1.442695, %v875_v27  ;;  %v879_v10 = vmul.f32 1.442695, %v876_v28  ;;  %v812_v19 = vpop.permute.xlu0 %811  ;;  %v1019_v28 = vld [vmem:[#allocation2] sm:$0xff] }
 0x35f   : > { %v814_v39 = vsub.f32 %v1694_v49, %v812_v19  ;;  %v815_v34 = vsub.f32 %v1696_v50, %v812_v19  ;;  %1304 = vmatprep.mubr.msk.f32.mxu1 %vm430_vm0, %v1019_v28 }
 0x360   : > { %1375 = vpow2.f32 %v877_v31 }
 0x361   : > { %1377 = vpow2.f32 %v879_v10  ;;  %v816_v18 = vmul.f32 1.442695, %v814_v39  ;;  %v818_v11 = vmul.f32 1.442695, %v815_v34 }
 0x363   : > { %1379 = vpow2.f32 %v816_v18  ;;  %v934_v32 = vpop.permute.xlu1 %933 }
 0x364   : > { %1381 = vpow2.f32 %v818_v11  ;;  %v936_v38 = vsub.f32 %v1700_v60, %v934_v32  ;;  %v937_v37 = vsub.f32 %v1702_v61, %v934_v32 }
 0x366   : > { %v938_v35 = vmul.f32 1.442695, %v936_v38  ;;  %v940_v29 = vmul.f32 1.442695, %v937_v37  ;;  %v995_v36 = vpop.permute.xlu0 %994 }
 0x367   : > { %v418_v40 = vpop.permute.xlu1 %417  ;;  %v997_v41 = vsub.f32 %v1706_v1, %v995_v36  ;;  %v998_v49 = vsub.f32 %v1708_v2, %v995_v36 }
 0x368   : > { %1383 = vpow2.f32 %v938_v35  ;;  %v552_v50 = vadd.f32 %v551_v0, %v418_v40  ;;  %v554_v42 = vadd.f32 %v553_v3, %v418_v40 }
 0x369   : > { %1385 = vpow2.f32 %v940_v29  ;;  %v999_v43 = vmul.f32 1.442695, %v997_v41  ;;  %v1001_v44 = vmul.f32 1.442695, %v998_v49 }
 0x36a   : > { %v1376_v45 = vpop.eup %1375  ;;  %v413_v46 = vpop.permute.xlu0 %412 }
 0x36b   : > { %v1378_v47 = vpop.eup %1377  ;;  %1387 = vpow2.f32 %v999_v43  ;;  %v546_v60 = vadd.f32 %v1720_v57, %v413_v46  ;;  %v548_v61 = vadd.f32 %v1725_v62, %v413_v46  ;;  %v888_v51 = vmul.f32 %v1376_v45, %v552_v50  ;;  %v428_v0 = vpop.permute.xlu1 %427 }
 0x36c   : > { %1389 = vpow2.f32 %v1001_v44  ;;  %v884_v48 = vadd.f32 %v1378_v47, %v1376_v45  ;;  %v889_v52 = vmul.f32 %v1378_v47, %v554_v42  ;;  %v564_v4 = vadd.f32 %v1740_v15, %v428_v0  ;;  %v1021_v44 = vld [vmem:[#allocation2 + $0x10] sm:$0xff]  ;;  %v1023_v45 = vld [vmem:[%s1824_s7] sm:$0xff] }
 0x36d   : > { %v1380_v1 = vpop.eup %1379  ;;  %v566_v23 = vadd.f32 %v1746_v21, %v428_v0 }
 0x36e   : > { %v1382_v2 = vpop.eup %1381  ;;  %885 = vadd.xlane.f32.xlu0 %v884_v48  ;;  %v423_v53 = vpop.permute.xlu0 %422  ;;  %v827_v54 = vmul.f32 %v1380_v1, %v546_v60  ;;  %v890_v63 = vadd.f32 %v889_v52, %v888_v51  ;;  %v1026_v48 = vld [vmem:[%s1824_s7 + $0x18] sm:$0xff]  ;;  %v1025_v51 = vld [vmem:[%s1824_s7 + $0x10] sm:$0xff] }
 0x36f   : > { %v558_v55 = vadd.f32 %v1731_v7, %v423_v53  ;;  %v823_v56 = vadd.f32 %v1382_v2, %v1380_v1  ;;  %v828_v58 = vmul.f32 %v1382_v2, %v548_v61  ;;  %v560_v59 = vadd.f32 %v1735_v13, %v423_v53 }
 0x371   : > { %824 = vadd.xlane.f32.xlu1 %v823_v56  ;;  %v829_v57 = vadd.f32 %v828_v58, %v827_v54 }
 0x372   : > { %v1384_v62 = vpop.eup %1383 }
 0x373   : > { %v1386_v3 = vpop.eup %1385  ;;  %v949_v6 = vmul.f32 %v1384_v62, %v558_v55 }
 0x374   : > { %v945_v5 = vadd.f32 %v1386_v3, %v1384_v62  ;;  %v950_v14 = vmul.f32 %v1386_v3, %v560_v59 }
 0x375   : > { %v1388_v20 = vpop.eup %1387 }
 0x376   : > { %v1390_v9 = vpop.eup %1389  ;;  %946 = vadd.xlane.f32.xlu0 %v945_v5  ;;  %v951_v7 = vadd.f32 %v950_v14, %v949_v6  ;;  %v1010_v17 = vmul.f32 %v1388_v20, %v564_v4 }
 0x377   : > { %v1006_v33 = vadd.f32 %v1390_v9, %v1388_v20  ;;  %v1011_v13 = vmul.f32 %v1390_v9, %v566_v23 }
 0x379   : > { %1007 = vadd.xlane.f32.xlu1 %v1006_v33  ;;  %v1012_v27 = vadd.f32 %v1011_v13, %v1010_v17 }
 0x37a   : > { %830 = vadd.xlane.f32.xlu0 %v829_v57 }
 0x37d   : > { %891 = vadd.xlane.f32.xlu1 %v890_v63 }
 0x37e   : > { %952 = vadd.xlane.f32.xlu0 %v951_v7 }
 0x381   : > { %1013 = vadd.xlane.f32.xlu1 %v1012_v27 }
 0x3fb   : > { %v886_v15 = vpop.xlane.xlu0 %885 }
 0x3fc   : > { %v887_v31 = vadd.f32 %v1733_v12, %v886_v15 }
 0x3fe   : > { %v825_v10 = vpop.xlane.xlu1 %824 }
 0x3ff   : > { %v826_v21 = vadd.f32 %v1748_v22, %v825_v10 }
 0x401   : > { %1391 = vrcp.f32 %v826_v21 }
 0x402   : > { %1393 = vrcp.f32 %v887_v31 }
 0x403   : > { %v947_v19 = vpop.xlane.xlu0 %946 }
 0x404   : > { %v948_v39 = vadd.f32 %v1757_v30, %v947_v19 }
 0x406   : > { %1395 = vrcp.f32 %v948_v39  ;;  %v1008_v34 = vpop.xlane.xlu1 %1007 }
 0x407   : > { %v1009_v18 = vadd.f32 %v1763_v25, %v1008_v34  ;;  %v831_v11 = vpop.xlane.xlu0 %830 }
 0x408   : > { %v833_v32 = vadd.f32 %v1754_v8, %v831_v11 }
 0x409   : > { %1397 = vrcp.f32 %v1009_v18 }
 0x40a   : > { %v892_v38 = vpop.xlane.xlu1 %891 }
 0x40b   : > { %v1392_v37 = vpop.eup %1391  ;;  %v894_v12 = vadd.f32 %v1743_v16, %v892_v38  ;;  %v953_v22 = vpop.xlane.xlu0 %952  ;;  %v1020_v16 = vld [vmem:[#allocation2 + $0x8] sm:$0xff] }
 0x40c   : > { %v1394_v35 = vpop.eup %1393  ;;  %v835_v29 = vmul.f32 %v1392_v37, %v833_v32  ;;  %v955_v40 = vadd.f32 %v1760_v24, %v953_v22  ;;  %v1022_v24 = vld [vmem:[#allocation2 + $0x18] sm:$0xff] }
 0x40d   : > { %v896_v36 = vmul.f32 %v1394_v35, %v894_v12 }
 0x40e   : > { %v1014_v41 = vpop.xlane.xlu1 %1013 }
 0x40f   : > { %v1334_v30 = vpack.c.bf16 %v896_v36, %v835_v29  ;;  %v1016_v25 = vadd.f32 %v1766_v26, %v1014_v41  ;;  %v1024_v26 = vld [vmem:[%s1824_s7 + $0x8] sm:$0xff] }
 0x410   : > { %v1396_v49 = vpop.eup %1395 }
 0x411   : > { %v957_v50 = vmul.f32 %v1396_v49, %v955_v40  ;;  %1335 = vmatprep.subr.bf16.mxu1 %v1334_v30 }
 0x412   : > { %1337 = vmatpush3.bf16.msra.mxu1 %v1334_v30 }
 0x413   : > { %v1398_v8 = vpop.eup %1397 }
 0x414   : > { %v1018_v42 = vmul.f32 %v1398_v8, %v1016_v25 }
 0x416   : > { %v1338_v43 = vpack.c.bf16 %v1018_v42, %v957_v50 }
 0x418   : > { %1339 = vmatprep.subr.bf16.mxu1 %v1338_v43 }
 0x419   : > { %1341 = vmatpush3.bf16.msra.mxu1 %v1338_v43 }
 0x41c   : > { %1305 = vmatmul.mubr.msk.f32.vlgmr.msra.gmra.mrb[12].mxu1 %vm430_vm0, %v1020_v16 }
 0x41d   : > { %1307 = vmatprep.mubr.msk.f32.mxu1 %vm430_vm0, %v1021_v44 }
 0x420   : > { %1308 = vmatmul.mubr.msk.f32.gmra.mrb[14].mxu1 %vm430_vm0, %v1022_v24 }
 0x4ef   : > { %v1306_v46 = vpop.f32.mrb[12].mxu1 }
 0x4f0   : > { %v1111_v47 = vadd.f32 %v1306_v46, %v1024_v26  ;;  %v1105_v60 = vpop.f32.mrb[13].mxu1 }
 0x4f1   : > { %v1106_v61 = vadd.f32 %v1105_v60, %v1023_v45 }
 0x4f2   : > { %1125 = vst.msk [vmem:[%s320_s26 + $0x8] sm:$0xff] %vm796_vm1, %v1111_v47 }
 0x4f3   : > { %1124 = vst.msk [vmem:[%s320_s26] sm:$0xff] %vm796_vm1, %v1106_v61  ;;  %v1309_v1 = vpop.f32.mrb[14].mxu1 }
 0x4f4   : > { %v1121_v52 = vadd.f32 %v1309_v1, %v1026_v48  ;;  %v1115_v2 = vpop.f32.mrb[15].mxu1 }
 0x4f5   : > { %v1116_v53 = vadd.f32 %v1115_v2, %v1025_v51 }
 0x4f6   : > { %1127 = vst.msk [vmem:[%s320_s26 + $0x18] sm:$0xff] %vm796_vm1, %v1121_v52 }
 0x4f7   : > { %1126 = vst.msk [vmem:[%s320_s26 + $0x10] sm:$0xff] %vm796_vm1, %v1116_v53 }
 0x4f8 PF: > { %s19_s27 = sadd.s32 1, %s1437_s27  }
 0x4f9   : > { %p16_p3 = scmp.ge.s32.totalorder %s19_s27, 4  }
 0x4fb   :  { %18 = sbr.rel (!%p16_p3) target bundleno = 1 (0x1), region = 87 }
 0x502   :  { %1149 = vsyncpa [#allocation3], 1 }
 0x503   :  { %1151 = vsyncpa [#allocation3 + $0x1], 1 }

</bundles_post_ra>
